<compile_context>
chip_gen: v5e
topology: v5e:2x2
jax: 0.10.0
libtpu: 0.0.40
codegen_flags: <defaults>
</compile_context>

<pallas_src>
import jax
import jax.numpy as jnp
from jax.experimental import pallas as pl
from jax.experimental.pallas import tpu as pltpu


def _round_up(a, b):
    return -(-a // b) * b


def _pick_tile(dim, target, align):
    """Pick a tile size (multiple of `align`, <= ~target) and the padded dim.

    Prefers a tile that divides `dim` exactly so no padding (and no post-kernel
    slice copy of the padded tensor) is needed.
    """
    target = max(align, _round_up(min(target, dim), align))
    if dim % align == 0:
        k = dim // align
        best = align
        for d in range(1, k + 1):
            if k % d == 0 and d * align <= target:
                best = d * align
        return best, dim
    return target, _round_up(dim, target)


def _vmem_capacity_bytes():
    try:
        info = pltpu.get_tpu_info()
        return int(getattr(info, "vmem_capacity_bytes", 64 * 1024 * 1024))
    except Exception:
        return 64 * 1024 * 1024  # conservative (v7x-sized) default


# ----------------------------- Pass 1: ResBlock chain -----------------------------
def _resblock_kernel(x_ref, wr_ref, br_ref, y_ref, acc_ref):
    """Grid point = (head h, token-tile m, res-layer l); l innermost ("arbitrary").

    x_ref  : (tm, H)  bf16  token tile of hidden states
    wr_ref : (H, H)   bf16  ResBlock weight for (h, l) (transposed: y @ wr == Linear(y))
    br_ref : (1, H)   f32   ResBlock bias for (h, l)
    y_ref  : (tm, H)  bf16  output tile (resident across l; written at the last l)
    acc_ref: (tm, H)  f32   VMEM scratch carrying y across the l axis
    """
    l = pl.program_id(2)

    @pl.when(l == 0)
    def _():
        acc_ref[...] = x_ref[...].astype(jnp.float32)

    y = acc_ref[...]                                                   # f32 carry
    z = jnp.dot(y.astype(jnp.bfloat16), wr_ref[...],                   # MXU, bf16 in
                preferred_element_type=jnp.float32)                    # f32 accumulate
    z = z + br_ref[...]
    y = y + z * jax.nn.sigmoid(z)                                      # SiLU in f32
    acc_ref[...] = y

    @pl.when(l == pl.num_programs(2) - 1)
    def _():
        y_ref[...] = y.astype(y_ref.dtype)


# ----------------------------- Pass 2: lm-head matmul -----------------------------
def _lm_head_kernel(y_ref, w_ref, o_ref):
    """Pure streaming matmul: o = y @ w (bf16 in, f32 accumulate)."""
    o_ref[...] = jnp.dot(y_ref[...], w_ref[...],
                         preferred_element_type=jnp.float32).astype(o_ref.dtype)


def medusa_heads_forward(hidden_states, res_w, res_b, head_w, *,
                         out_dtype=jnp.bfloat16, tm=None, tn=None):
    """Run all Medusa heads on `hidden_states`.

    hidden_states: (B, S, H)
    res_w : (num_heads, L, H, H)  transposed ResBlock weights (x @ res_w == Linear(x))
    res_b : (num_heads, L, 1, H)
    head_w: (num_heads, H, V) per-head, or (H, V) shared across heads
    returns: (num_heads, B, S, V) in `out_dtype`
    """
    B, S, H = hidden_states.shape
    G, L = int(res_w.shape[0]), int(res_w.shape[1])
    shared_head = head_w.ndim == 2
    V = int(head_w.shape[-1])
    M = B * S
    out_itemsize = jnp.dtype(out_dtype).itemsize

    # bf16 matmul operands (native MXU input); bias / residual / SiLU stay f32.
    x = hidden_states.reshape(M, H).astype(jnp.bfloat16)
    res_w = res_w.astype(jnp.bfloat16)
    res_b = res_b.reshape(G, L, 1, H).astype(jnp.float32)
    head_w = head_w.astype(jnp.bfloat16)

    # Generation-aware tiling: v5e/v6e have 128 MiB VMEM, v7x has 64 MiB per TC.
    vmem_cap = _vmem_capacity_bytes()
    big_vmem = vmem_cap >= 100 * 1024 * 1024
    tm_target = tm if tm is not None else (512 if big_vmem else 256)
    tn_target = tn if tn is not None else (2048 if big_vmem else 1024)
    vmem_limit = int(min(100 * 1024 * 1024, 0.78 * vmem_cap))

    tm1, M_pad = _pick_tile(M, tm_target, 8)
    if M_pad != M:
        x = jnp.pad(x, ((0, M_pad - M), (0, 0)))

    # ------------------- Pass 1: ResBlock chain -> Y (G, M_pad, H) -------------------
    if L == 0:
        y_all = jnp.broadcast_to(x[None], (G, M_pad, H))
    else:
        # Only one (H, H) slab lives in VMEM per grid step.  Single-buffer it when
        # double-buffering would bust the VMEM budget (H=4096 on v7x: 2x32 MiB).
        slab = H * H * 2
        other = 2 * tm1 * H * 2 + 2 * tm1 * H * 2 + tm1 * H * 4 + 2 * H * 4
        wr_kwargs = {} if (2 * slab + other) <= vmem_limit else dict(
            pipeline_mode=pl.Buffered(1))
        # TODO(synk): if a single (H, H) slab still exceeds VMEM, res_w would need
        # manual output-H tiling with make_async_copy; not implemented here.

        y_all = pl.pallas_call(
            _resblock_kernel,
            out_shape=jax.ShapeDtypeStruct((G, M_pad, H), jnp.bfloat16),
            grid_spec=pltpu.PrefetchScalarGridSpec(
                num_scalar_prefetch=0,
                grid=(G, M_pad // tm1, L),
                in_specs=[
                    pl.BlockSpec((tm1, H), lambda h, m, l: (m, 0)),                  # x
                    pl.BlockSpec((None, None, H, H),
                                 lambda h, m, l: (h, l, 0, 0), **wr_kwargs),         # res_w
                    pl.BlockSpec((None, None, 1, H), lambda h, m, l: (h, l, 0, 0)),  # res_b
                ],
                out_specs=pl.BlockSpec((None, tm1, H), lambda h, m, l: (h, m, 0)),
                scratch_shapes=[pltpu.VMEM((tm1, H), jnp.float32)],
            ),
            compiler_params=pltpu.CompilerParams(
                dimension_semantics=("parallel", "parallel", "arbitrary"),
                vmem_limit_bytes=vmem_limit,
            ),
            cost_estimate=pl.CostEstimate(
                flops=int(2 * G * L * M_pad * H * H),
                transcendentals=int(G * L * M_pad * H),
                bytes_accessed=int(
                    G * M_pad * H * 2                                    # x per head
                    + (1 if L == 1 else M_pad // tm1) * res_w.size * 2   # res_w re-reads
                    + res_b.size * 4
                    + G * M_pad * H * 2),                                # Y written once
            ),
        )(x, res_w, res_b)

    # ------------------- Pass 2: lm-head (bandwidth-bound streaming matmul) ----------
    tn2, V_pad = _pick_tile(V, tn_target, 128)
    if V_pad != V:
        # Padded vocab columns produce zero logits; they are sliced off below.
        pad_cfg = ((0, 0),) * (head_w.ndim - 1) + ((0, V_pad - V),)
        head_w = jnp.pad(head_w, pad_cfg)

    if shared_head:
        # Fold heads into the token dim: head_w (the dominant HBM stream) is read
        # exactly once, and the MXU sees G*tm rows even during decode.
        y2 = y_all.reshape(G * M_pad, H)
        tm2, M2_pad = _pick_tile(G * M_pad, tm_target, 8)
        if M2_pad != G * M_pad:
            y2 = jnp.pad(y2, ((0, M2_pad - G * M_pad), (0, 0)))
        grid2 = (V_pad // tn2, M2_pad // tm2)          # vocab OUTER, tokens INNER ->
        in_specs2 = [                                  # head_w tile reused across all m.
            pl.BlockSpec((tm2, H), lambda n, m: (m, 0)),
            pl.BlockSpec((H, tn2), lambda n, m: (0, n)),
        ]
        out_specs2 = pl.BlockSpec((tm2, tn2), lambda n, m: (m, n))
        out_shape2 = jax.ShapeDtypeStruct((M2_pad, V_pad), out_dtype)
        dims2 = ("parallel", "parallel")               # no accumulation -> megacore OK
        flops2 = 2 * M2_pad * H * V_pad
        bytes2 = (head_w.size * 2 + (V_pad // tn2) * y2.size * 2
                  + M2_pad * V_pad * out_itemsize)
        args2 = (y2, head_w)
    else:
        tm2, M2_pad = _pick_tile(M_pad, tm_target, 8)  # divides M_pad -> no new padding
        grid2 = (G, V_pad // tn2, M2_pad // tm2)
        in_specs2 = [
            pl.BlockSpec((None, tm2, H), lambda h, n, m: (h, m, 0)),
            pl.BlockSpec((None, H, tn2), lambda h, n, m: (h, 0, n)),
        ]
        out_specs2 = pl.BlockSpec((None, tm2, tn2), lambda h, n, m: (h, m, n))
        out_shape2 = jax.ShapeDtypeStruct((G, M2_pad, V_pad), out_dtype)
        dims2 = ("parallel", "parallel", "parallel")
        flops2 = 2 * G * M2_pad * H * V_pad
        bytes2 = (head_w.size * 2 + G * (V_pad // tn2) * M2_pad * H * 2
                  + G * M2_pad * V_pad * out_itemsize)
        args2 = (y_all, head_w)

    logits = pl.pallas_call(
        _lm_head_kernel,
        out_shape=out_shape2,
        grid_spec=pltpu.PrefetchScalarGridSpec(
            num_scalar_prefetch=0, grid=grid2,
            in_specs=in_specs2, out_specs=out_specs2),
        compiler_params=pltpu.CompilerParams(
            dimension_semantics=dims2, vmem_limit_bytes=vmem_limit),
        cost_estimate=pl.CostEstimate(flops=int(flops2), transcendentals=0,
                                      bytes_accessed=int(bytes2)),
    )(*args2)

    if shared_head:
        logits = logits[:G * M_pad].reshape(G, M_pad, V_pad)
    out = logits[:, :M, :V]            # no-op when tiles divide M and V exactly
    return out.reshape(G, B, S, V)


# ----------------------------------- Reference -----------------------------------
def _reference_forward(hidden_states, res_w, res_b, head_w):
    """Pure-JAX reference mirroring the PyTorch module semantics with the kernel's
    bf16-operand / f32-accumulate dtype strategy."""
    G, L = res_w.shape[0], res_w.shape[1]
    shared = head_w.ndim == 2
    B, S, H = hidden_states.shape
    x = hidden_states.reshape(B * S, H).astype(jnp.bfloat16).astype(jnp.float32)
    outs = []
    for h in range(G):
        y = x
        for l in range(L):
            z = jnp.dot(y.astype(jnp.bfloat16), res_w[h, l].astype(jnp.bfloat16),
                        preferred_element_type=jnp.float32)
            z = z + res_b[h, l].reshape(1, H).astype(jnp.float32)
            y = y + z * jax.nn.sigmoid(z)
        wh = head_w if shared else head_w[h]
        outs.append(jnp.dot(y.astype(jnp.bfloat16), wh.astype(jnp.bfloat16),
                            preferred_element_type=jnp.float32))
    return jnp.stack(outs, 0).reshape(G, B, S, -1)


if __name__ == "__main__":
    # Small, module-consistent shapes (B, S, hidden, vocab).
    B, S, H, V = 2, 8, 32, 256
    NUM_HEADS = 4      # medusa_num_heads
    NUM_LAYERS = 1     # medusa_num_layers (ResBlocks per head)

    key = jax.random.PRNGKey(0)
    k_x, k_w, k_b, k_h = jax.random.split(key, 4)

    hidden_states = jax.random.normal(k_x, (B, S, H), jnp.float32)
    # NOTE: the module initializes ResBlock weights to zero and copies lm_head into
    # every head; random per-head weights are used here for a stronger correctness check.
    res_w = jax.random.normal(k_w, (NUM_HEADS, NUM_LAYERS, H, H), jnp.float32) * 0.05
    bound = 1.0 / (H ** 0.5)
    res_b = jax.random.uniform(k_b, (NUM_HEADS, NUM_LAYERS, 1, H), jnp.float32,
                               -bound, bound)
    head_w = jax.random.normal(k_h, (NUM_HEADS, H, V), jnp.float32) * 0.02

    # Per-head lm-head path.
    logits = medusa_heads_forward(hidden_states, res_w, res_b, head_w)
    logits = jax.block_until_ready(logits)
    assert logits.shape == (NUM_HEADS, B, S, V)
    ref = _reference_forward(hidden_states, res_w, res_b, head_w)
    assert jnp.allclose(logits.astype(jnp.float32), ref, atol=2e-2, rtol=2e-2), \
        "mismatch vs reference (per-head lm-head)"

    # Shared lm-head path (matches the module init: every head copies base lm_head).
    logits_s = medusa_heads_forward(hidden_states, res_w, res_b, head_w[0])
    logits_s = jax.block_until_ready(logits_s)
    ref_s = _reference_forward(hidden_states, res_w, res_b, head_w[0])
    assert jnp.allclose(logits_s.astype(jnp.float32), ref_s, atol=2e-2, rtol=2e-2), \
        "mismatch vs reference (shared lm-head)"

    print("KERNEL_OK")
</pallas_src>

<mosaic_0001>
module attributes {stable_mosaic.version = 11 : i64} {
  func.func @_resblock_kernel(%arg0: i32, %arg1: i32, %arg2: i32, %arg3: memref<16x32xbf16, #tpu.memory_space<vmem>>, %arg4: memref<1x1x32x32xbf16, #tpu.memory_space<vmem>>, %arg5: memref<1x1x1x32xf32, #tpu.memory_space<vmem>>, %arg6: memref<1x16x32xbf16, #tpu.memory_space<vmem>>, %arg7: memref<16x32xf32, #tpu.memory_space<vmem>>) attributes {dimension_semantics = [#tpu.dimension_semantics<parallel>, #tpu.dimension_semantics<parallel>, #tpu.dimension_semantics<arbitrary>], iteration_bounds = array<i64: 4, 1, 1>, scalar_prefetch = 0 : i64, scratch_operands = 1 : i64, tpu.core_type = #tpu.core_type<tc>, window_params = [{transform_indices = @transform_0, window_bounds = array<i64: 16, 32>}, {transform_indices = @transform_1, window_bounds = array<i64: 1, 1, 32, 32>}, {transform_indices = @transform_2, window_bounds = array<i64: 1, 1, 1, 32>}, {transform_indices = @transform_3, window_bounds = array<i64: 1, 16, 32>}]} {
    %c0_i32 = arith.constant 0 : i32
    %0 = arith.cmpi eq, %arg2, %c0_i32 : i32
    %1 = arith.extui %0 : i1 to i32
    %c0_i32_0 = arith.constant 0 : i32
    %2 = arith.cmpi ne, %1, %c0_i32_0 : i32
    scf.if %2 {
      %c0_15 = arith.constant 0 : index
      %c0_16 = arith.constant 0 : index
      %23 = vector.load %arg3[%c0_15, %c0_16] : memref<16x32xbf16, #tpu.memory_space<vmem>>, vector<16x32xbf16>
      %24 = arith.extf %23 : vector<16x32xbf16> to vector<16x32xf32>
      %c0_17 = arith.constant 0 : index
      %c0_18 = arith.constant 0 : index
      %25 = vector.load %arg7[%c0_17, %c0_18] : memref<16x32xf32, #tpu.memory_space<vmem>>, vector<16x32xf32>
      tpu.vector_store %arg7[%c0_17, %c0_18], %24 {strides = array<i32>} : memref<16x32xf32, #tpu.memory_space<vmem>>, vector<16x32xf32>,
    } else {
    }
    %c0 = arith.constant 0 : index
    %c0_1 = arith.constant 0 : index
    %3 = vector.load %arg7[%c0, %c0_1] : memref<16x32xf32, #tpu.memory_space<vmem>>, vector<16x32xf32>
    %4 = arith.truncf %3 : vector<16x32xf32> to vector<16x32xbf16>
    %c0_2 = arith.constant 0 : index
    %c0_3 = arith.constant 0 : index
    %c0_4 = arith.constant 0 : index
    %c0_5 = arith.constant 0 : index
    %5 = vector.load %arg4[%c0_2, %c0_3, %c0_4, %c0_5] : memref<1x1x32x32xbf16, #tpu.memory_space<vmem>>, vector<1x1x32x32xbf16>
    %6 = vector.shape_cast %5 : vector<1x1x32x32xbf16> to vector<32x32xbf16>
    %cst = arith.constant dense<0.000000e+00> : vector<16x32xf32>
    %7 = tpu.matmul %4, %6, %cst {dimension_numbers = #tpu.dot_dimension_numbers<[1], [0], [0], [1], [0, 0, 1, 1], [], []>} : vector<16x32xbf16>, vector<32x32xbf16>, vector<16x32xf32> -> vector<16x32xf32>
    %c0_6 = arith.constant 0 : index
    %c0_7 = arith.constant 0 : index
    %c0_8 = arith.constant 0 : index
    %c0_9 = arith.constant 0 : index
    %8 = vector.load %arg5[%c0_6, %c0_7, %c0_8, %c0_9] : memref<1x1x1x32xf32, #tpu.memory_space<vmem>>, vector<1x1x1x32xf32>
    %9 = vector.shape_cast %8 : vector<1x1x1x32xf32> to vector<1x32xf32>
    %10 = vector.broadcast %9 : vector<1x32xf32> to vector<16x32xf32>
    %11 = arith.addf %7, %10 : vector<16x32xf32>
    %12 = arith.negf %11 : vector<16x32xf32>
    %13 = math.exp %12 : vector<16x32xf32>
    %cst_10 = arith.constant 1.000000e+00 : f32
    %14 = vector.broadcast %cst_10 : f32 to vector<16x32xf32>
    %15 = arith.addf %14, %13 : vector<16x32xf32>
    %16 = arith.divf %14, %15 : vector<16x32xf32>
    %17 = arith.mulf %11, %16 : vector<16x32xf32>
    %18 = arith.addf %3, %17 : vector<16x32xf32>
    %c0_11 = arith.constant 0 : index
    %c0_12 = arith.constant 0 : index
    %19 = vector.load %arg7[%c0_11, %c0_12] : memref<16x32xf32, #tpu.memory_space<vmem>>, vector<16x32xf32>
    tpu.vector_store %arg7[%c0_11, %c0_12], %18 {strides = array<i32>} : memref<16x32xf32, #tpu.memory_space<vmem>>, vector<16x32xf32>,
    %c0_i32_13 = arith.constant 0 : i32
    %20 = arith.cmpi eq, %arg2, %c0_i32_13 : i32
    %21 = arith.extui %20 : i1 to i32
    %c0_i32_14 = arith.constant 0 : i32
    %22 = arith.cmpi ne, %21, %c0_i32_14 : i32
    scf.if %22 {
      %23 = arith.truncf %18 : vector<16x32xf32> to vector<16x32xbf16>
      %c0_15 = arith.constant 0 : index
      %c0_16 = arith.constant 0 : index
      %c0_17 = arith.constant 0 : index
      %24 = vector.load %arg6[%c0_15, %c0_16, %c0_17] : memref<1x16x32xbf16, #tpu.memory_space<vmem>>, vector<1x16x32xbf16>
      %25 = vector.shape_cast %24 : vector<1x16x32xbf16> to vector<16x32xbf16>
      %26 = vector.shape_cast %23 : vector<16x32xbf16> to vector<1x16x32xbf16>
      tpu.vector_store %arg6[%c0_15, %c0_16, %c0_17], %26 {strides = array<i32>} : memref<1x16x32xbf16, #tpu.memory_space<vmem>>, vector<1x16x32xbf16>,
    } else {
    }
    return
  }
  func.func @transform_0(%arg0: i32, %arg1: i32, %arg2: i32) -> (i32, i32) {
    %c0_i32 = arith.constant 0 : i32
    %c0_i32_0 = arith.constant 0 : i32
    return %arg1, %c0_i32 : i32, i32
  }
  func.func @transform_1(%arg0: i32, %arg1: i32, %arg2: i32) -> (i32, i32, i32, i32) {
    %c0_i32 = arith.constant 0 : i32
    %c0_i32_0 = arith.constant 0 : i32
    %c0_i32_1 = arith.constant 0 : i32
    return %arg0, %arg2, %c0_i32, %c0_i32_0 : i32, i32, i32, i32
  }
  func.func @transform_2(%arg0: i32, %arg1: i32, %arg2: i32) -> (i32, i32, i32, i32) {
    %c0_i32 = arith.constant 0 : i32
    %c0_i32_0 = arith.constant 0 : i32
    %c0_i32_1 = arith.constant 0 : i32
    return %arg0, %arg2, %c0_i32, %c0_i32_0 : i32, i32, i32, i32
  }
  func.func @transform_3(%arg0: i32, %arg1: i32, %arg2: i32) -> (i32, i32, i32) {
    %c0_i32 = arith.constant 0 : i32
    %c0_i32_0 = arith.constant 0 : i32
    return %arg0, %arg1, %c0_i32 : i32, i32, i32
  }
}

</mosaic_0001>

<bundles_post_ra>
// kernel: tpu_custom_call.1
= control target key start
LH: loop header
LB: loop body
LE: loop exit
PB: predicated region body
PF: predicated region fallthrough
CT: control target
= control target key end

     0   :  { %8 = vsyncpa [#allocation4], 0  ;;  %s1035_s0 = inlined_call_operand.hbm [shape: bf16[16,32], index: 0, kind: input, shape index: {}]   ;;  %s1036_s1 = inlined_call_operand.hbm [shape: bf16[4,1,32,32], index: 1, kind: input, shape index: {}]   ;;  %s1037_s2 = inlined_call_operand.hbm [shape: f32[4,1,1,32], index: 2, kind: input, shape index: {}]   ;;  %s1038_s3 = inlined_call_operand.hbm [shape: bf16[4,16,32], index: 3, kind: output, shape index: {}]  }
   0x1   :  { %9 = vsyncpa [#allocation7], 0 }
   0x2   :  { %11 = vsyncpa [#allocation7 + $0x1], 0 }
   0x3   :  { %12 = vsyncpa [#allocation5], 0 }
   0x4   :  { %14 = vsyncpa [#allocation5 + $0x1], 0  ;;  %s852_s12 = smov 0   ;;  %s854_s13 = smov 0  }
   0x5   :  { %s856_s14 = smov 0   ;;  %s858_s15 = smov 0  }
   0x6   :  { %s860_s16 = smov 0   ;;  %s862_s17 = smov 0  }
   0x7 LB: > { %s39_s18 = sadd.s32 1, %s821_s16  ;;  %s74_s19 = sadd.s32 1, %s813_s14  ;;  %s825_s17 = sphi %s862_s17, %s20_s17   ;;  %s821_s16 = sphi %s860_s16, %s1049_s16   ;;  %s817_s15 = sphi %s858_s15, %s1048_s15   ;;  %s813_s14 = sphi %s856_s14, %s1047_s14   ;;  %s809_s13 = sphi %s854_s13, %s1046_s13   ;;  %s805_s12 = sphi %s852_s12, %s1045_s12  }
   0x8   : > { %p41_p0 = scmp.ge.s32.totalorder %s39_s18, 4  ;;  %p81_p1 = scmp.ne.s32.totalorder %s813_s14, %s809_s13 }
   0x9   : > { %p82_p2 = scmp.eq.s32.totalorder %s825_s17, 0  ;;  %p584_p5 = scmp.lt.s32.totalorder %s825_s17, 4 }
   0xa   : > { %s1051_s18 = smov (%p41_p0, %s39_s18), 0  ;;  %s184_s22 = sand.u32 1, %s825_s17  }
   0xb   : > { %p892_p3 = por %p82_p2, %p81_p1  ;;  %s69_s21 = ssub.s32 %s821_s16, %s1051_s18 }
   0xc   : > { %p72_p4 = scmp.eq.s32.totalorder %s69_s21, 0  ;;  %s186_s23 = sand.u32 1, %s813_s14  }
   0xd   : > { %s527_s25 = sshll.u32 %s186_s23, 4  ;;  %s550_s26 = sshll.u32 %s821_s16, 4 }
   0xe   : > { %s902_s24 = scalar_select %p72_p4, %s813_s14, %s74_s19  }
   0xf   : > { %s195_s29 = scalar_lea.hbm %s1036_s1, %s550_s26  ;;  %s188_s30 = scalar_lea.vmem [#allocation6], %s527_s25 }
  0x10   : > { %s198_s4 = sshll.u32 %s188_s30, 4  ;;  %s196_s5 = sshll.u32 %s195_s29, 4  ;;  %s199_s4 = int_to_ptr.vmem [resolvable:$true] %s198_s4  ;;  %s197_s5 = int_to_ptr.hbm [resolvable:$true] %s196_s5 }
  0x11   : > { %p912_p6 = pnand %p584_p5, %p892_p3  ;;  %s916_s7 = scalar_lea.sflag [#allocation7], %s184_s22 }
  0x12   : > { %s827_s8 = smov 64   ;;  %s828_s9 = smov 4  }
  0x13   : > { %575 = dma.hbm_to_vmem [thread:$0]  (!%p912_p6), %s197_s5, 256, %s199_s4, %s916_s7, %s827_s8, %s827_s8, %s828_s9  }
  0x14   : > { %s925_s10 = sadd.s32 4294967295, %s825_s17   ;;  %s523_s11 = sadd.s32 4294967294, %s825_s17  }
  0x15   : > { %p87_p7 = scmp.ne.s32.totalorder %s809_s13, %s805_s12  ;;  %p88_p8 = scmp.eq.s32.totalorder %s925_s10, 0 }
  0x16   : > { %p141_p9 = scmp.eq.s32.totalorder %s925_s10, 3  ;;  %p147_p10 = scmp.eq.s32.totalorder %s523_s11, 3 }
  0x17   : > { %p524_p11 = scmp.ge.s32.totalorder %s825_s17, 1  ;;  %p935_p12 = por %p88_p8, %p87_p7 }
  0x18   : > { %p942_p13 = por %p141_p9, %p81_p1  ;;  %p946_p0 = por %p147_p10, %p87_p7 }
  0x19   : > { %p154_p2 = scmp.lt.s32.totalorder %s825_s17, 5  ;;  %s168_s26 = sshll.u32 %s1035_s0, 4  ;;  %s169_s26 = int_to_ptr.hbm [resolvable:$true] %s168_s26 }
  0x1a   : > { %s829_s28 = smov [#allocation3]   ;;  %s215_s5 = scalar_lea.hbm %s1037_s2, %s821_s16 }
  0x1b   : > { %p954_p3 = pnand %p524_p11, %p154_p2  ;;  %s170_s29 = sshll.u32 %s829_s28, 4  ;;  %s171_s29 = int_to_ptr.vmem [resolvable:$true] %s170_s29 }
  0x1c   : > { %s217_s11 = sshll.u32 %s215_s5, 4  ;;  %s211_s22 = scalar_lea.vmem [#allocation8], %s186_s23  ;;  %s218_s11 = int_to_ptr.hbm [resolvable:$true] %s217_s11 }
  0x1d   : > { %p568_p1 = pneg %p954_p3  ;;  %s219_s25 = sshll.u32 %s211_s22, 4  ;;  %s220_s25 = int_to_ptr.vmem [resolvable:$true] %s219_s25 }
  0x1e   : > { %578 = dma.hbm_to_vmem [thread:$0]  (!%p912_p6), %s218_s11, 16, %s220_s25, %s916_s7  }
  0x1f   : > { %p569_p4 = pnand %p568_p1, %p88_p8  ;;  %228 = sbr.rel (%p954_p3) target bundleno = 230 (0xe6), region = 32 }
  0x21   : > { %571 = dma.hbm_to_vmem [thread:$0]  (!%p569_p4), %s169_s26, 128, %s171_s29, [#allocation4], %s827_s8, %s827_s8, %s828_s9  }
  0x24   : > { %792 = dma.done.wait (%p88_p8), [#allocation4], 128  }
  0x25   : > { %794 = vsyncadd (%p88_p8), [#allocation4], 4294967168  ;;  %s235_s23 = sand.u32 1, %s925_s10   ;;  %s982_s28 = sand.u32 1, %s809_s13  }
  0x26   : > { %s532_s30 = sshll.u32 %s982_s28, 4  ;;  %s236_s8 = scalar_lea.sflag [#allocation7], %s235_s23 }
  0x27   : > { %s239_s6 = scalar_lea.vmem [#allocation6], %s532_s30 }
  0x28   : > { %796 = dma.done.wait (%p935_p12), %s236_s8, 272  }
  0x29   : > { %798 = vsyncadd (%p935_p12), %s236_s8, 4294967024  ;;  %v552_v0 = vld [vmem:[%s239_s6 + $0x8] sm:$0xff]  ;;  %vm287_vm0 = vcmask 261120   ;;  %s248_s7 = scalar_lea.vmem [#allocation8], %s982_s28  ;;  %v551_v4 = vld [vmem:[%s239_s6] sm:$0xff]  ;;  %s533_s9 = sshll.u32 %s982_s28, 3 }
  0x2a   : > { %v555_v1 = vld [vmem:[#allocation3] sm:$0xff]   ;;  %323 = vmatpush.bf16.msra.mxu0 %v552_v0  ;;  %v640_v8 = vld [vmem:[%s248_s7] ss:$0 sm:$0xff]  ;;  %s553_s10 = sshll.u32 %s817_s15, 3  ;;  %vm380_vm6 = vcmask 257024   ;;  %s275_s29 = scalar_lea.vmem [#allocation9], %s533_s9 }
  0x2b   : > { %v556_v2 = vunpack.c.l.bf16 %v555_v1  ;;  %v557_v3 = vunpack.c.h.bf16 %v555_v1  ;;  %s397_s27 = scalar_lea.hbm %s1038_s3, %s553_s10  ;;  %s398_s15 = sshll.u32 %s275_s29, 4  ;;  %s399_s15 = int_to_ptr.vmem [resolvable:$true] %s398_s15 }
  0x2c   : > { %s400_s4 = sshll.u32 %s397_s27, 4  ;;  %s384_s5 = scalar_lea.sflag [#allocation5], %s982_s28  ;;  %s401_s4 = int_to_ptr.hbm [resolvable:$true] %s400_s4 }
  0x2d   : > { %288 = vst.msk [vmem:[#allocation2] sm:$0xff] %vm287_vm0, %v556_v2  ;;  %s753_s11 = sshra.s32 %s401_s4, 4  ;;  %s759_s30 = scalar_lea.hbm %s1038_s3, 32  ;;  %s754_s11 = int_to_ptr.hbm [resolvable:$true] %s753_s11 }
  0x2e   : > { %289 = vst.msk [vmem:[#allocation2 + $0x8] sm:$0xff] %vm287_vm0, %v557_v3  ;;  %324 = vmatpush.bf16.msra.mxu0 %v551_v4  ;;  %s755_s22 = scalar_lea.hbm %s754_s11, 8  ;;  %p760_p8 = scmp.lt.s32.totalorder %s754_s11, %s1038_s3 }
  0x2f   : > { %p756_p5 = scmp.ne.s32.totalorder %s754_s11, %s755_s22  ;;  %p761_p9 = scmp.lt.s32.totalorder %s759_s30, %s755_s22 }
  0x31   : > { %p757_p6 = pnand %p756_p5, %p942_p13  ;;  %p762_p10 = por %p761_p9, %p760_p8 }
  0x33   : > { %p758_p7 = pneg %p757_p6 }
  0x34   : > { %v290_v5 = vld [vmem:[#allocation2] sm:$0xff] }
  0x35   : > { %v291_v6 = vld [vmem:[#allocation2 + $0x8] sm:$0xff]  ;;  %p763_p11 = pnand %p762_p10, %p758_p7 }
  0x36   : > { %v292_v7 = vpack.c.bf16 %v291_v6, %v290_v5 }
  0x38   : > { %542 = vmatmul.msk.bf16.vlgmr.msra.gmra.mxu0 %vm287_vm0, %v292_v7 }
  0xb5   : > { %v326_v9 = vpop.f32.mrf.mxu0 }
  0xb6   : > { %v327_v10 = vadd.f32 %v640_v8, %v326_v9 }
  0xb8   : > { %v543_v11 = vmul.f32 -1.442695, %v327_v10 }
  0xba   : > { %641 = vpow2.f32 %v543_v11 }
  0xbd   : > { %v328_v12 = vpop.f32.mrf.mxu0 }
  0xbe   : > { %v329_v13 = vadd.f32 %v640_v8, %v328_v12 }
  0xc0   : > { %v642_v14 = vpop.eup %641  ;;  %v544_v15 = vmul.f32 -1.442695, %v329_v13 }
  0xc1   : > { %v337_v16 = vadd.f32 1.0, %v642_v14 }
  0xc2   : > { %643 = vpow2.f32 %v544_v15 }
  0xc3   : > { %645 = vrcp.f32 %v337_v16  ;;  %v350_v22 = vand.u32 2147483648, %v337_v16  ;;  %v348_v24 = vand.u32 2147483647, %v337_v16  ;;  %vm344_vm2 = vweird.f32 %v337_v16 }
  0xc5   : > { %v351_v27 = vor.u32 1.1754944e-38, %v350_v22  ;;  %vm349_vm4 = vcmp.eq.f32.partialorder %v348_v24, 8.507059e+37 }
  0xc8   : > { %v644_v17 = vpop.eup %643 }
  0xc9   : > { %v646_v18 = vpop.eup %645  ;;  %v338_v19 = vadd.f32 1.0, %v644_v17 }
  0xca   : > { %v340_v20 = vmul.f32 %v646_v18, %v337_v16  ;;  %vm345_vm1 = vweird.f32 %v646_v18 }
  0xcb   : > { %647 = vrcp.f32 %v338_v19  ;;  %vm346_vm3 = vmor %vm344_vm2, %vm345_vm1  ;;  %v365_v33 = vand.u32 2147483648, %v338_v19  ;;  %v363_v36 = vand.u32 2147483647, %v338_v19  ;;  %vm359_vm7 = vweird.f32 %v338_v19 }
  0xcc   : > { %v341_v21 = vsub.f32 1.0, %v340_v20 }
  0xcd   : > { %v366_v39 = vor.u32 1.1754944e-38, %v365_v33  ;;  %vm364_vm9 = vcmp.eq.f32.partialorder %v363_v36, 8.507059e+37 }
  0xce   : > { %v342_v23 = vmul.f32 %v646_v18, %v341_v21 }
  0xd0   : > { %v343_v25 = vadd.f32 %v646_v18, %v342_v23 }
  0xd1   : > { %v648_v26 = vpop.eup %647 }
  0xd2   : > { %v347_v28 = vsel %vm346_vm3, %v646_v18, %v343_v25  ;;  %v355_v29 = vmul.f32 %v648_v26, %v338_v19  ;;  %vm360_vm5 = vweird.f32 %v648_v26 }
  0xd3   : > { %v352_v30 = vsel %vm349_vm4, %v351_v27, %v347_v28  ;;  %vm361_vm8 = vmor %vm359_vm7, %vm360_vm5 }
  0xd4   : > { %v369_v31 = vmul.f32 %v352_v30, %v327_v10  ;;  %v356_v32 = vsub.f32 1.0, %v355_v29 }
  0xd6   : > { %v371_v34 = vadd.f32 %v369_v31, %v290_v5  ;;  %v357_v35 = vmul.f32 %v648_v26, %v356_v32 }
  0xd8   : > { %373 = vst.msk [vmem:[#allocation2] sm:$0xff] %vm287_vm0, %v371_v34  ;;  %v378_v37 = vpack.c.bf16 %v371_v34, %v371_v34  ;;  %v358_v38 = vadd.f32 %v648_v26, %v357_v35 }
  0xda   : > { %381 = vst.msk [vmem:[%s275_s29] sm:$0xf] %vm380_vm6, %v378_v37  ;;  %v362_v40 = vsel %vm361_vm8, %v648_v26, %v358_v38 }
  0xdb   : > { %v367_v41 = vsel %vm364_vm9, %v366_v39, %v362_v40 }
  0xdc   : > { %v370_v42 = vmul.f32 %v367_v41, %v329_v13 }
  0xde   : > { %v372_v43 = vadd.f32 %v370_v42, %v291_v6 }
  0xe0   : > { %374 = vst.msk [vmem:[#allocation2 + $0x8] sm:$0xff] %vm287_vm0, %v372_v43  ;;  %v379_v44 = vpack.c.bf16 %v372_v43, %v372_v43 }
  0xe2   : > { %382 = vst.msk [vmem:[%s275_s29 + $0x4] sm:$0xf] %vm380_vm6, %v379_v44 }
  0xe3   : > { %766 = shalt.err (!%p763_p11)
}
  0xe4   : > { %s830_s28 = smov 64   ;;  %s831_s7 = smov 4  }
  0xe5   : > { %566 = dma.vmem_to_hbm [thread:$0]  (%p942_p13), %s399_s15, 128, %s401_s4, %s384_s5, %s830_s28, %s830_s28, %s831_s7  }
  0xe6 PF: > { %p586_p12 = scmp.ge.s32.totalorder %s825_s17, 2  ;;  %s415_s9 = sand.u32 1, %s805_s12  }
  0xe7   : > { %s416_s10 = scalar_lea.sflag [#allocation5], %s415_s9 }
  0xe8   : > { %p580_p2 = pnand %p586_p12, %p946_p0 }
  0xea   : > { %p581_p3 = pneg %p580_p2 }
  0xec   : > { %800 = dma.done.wait (%p581_p3), %s416_s10, 128  }
  0xed   : > { %802 = vsyncadd (%p581_p3), %s416_s10, 4294967168  ;;  %s20_s17 = sadd.s32 1, %s825_s17   ;;  %s1045_s12 = smov %s809_s13 }
  0xee   : > { %p17_p1 = scmp.ge.s32.totalorder %s20_s17, 6   ;;  %s1046_s13 = smov %s813_s14 }
  0xef   : > { %s1047_s14 = smov %s902_s24  ;;  %s1048_s15 = smov %s821_s16 }
  0xf0   : > { %s1049_s16 = smov %s1051_s18  ;;  %19 = sbr.rel (!%p17_p1) target bundleno = 7 (0x7), region = 102 }
  0xf5   :  { %422 = vsyncpa [#allocation4], 1 }
  0xf6   :  { %424 = vsyncpa [#allocation4 + $0x1], 1 }
  0xf7   :  { %425 = vsyncpa [#allocation7], 1 }
  0xf8   :  { %427 = vsyncpa [#allocation7 + $0x1], 1 }
  0xf9   :  { %428 = vsyncpa [#allocation5], 1 }
  0xfa   :  { %430 = vsyncpa [#allocation5 + $0x1], 1 }

</bundles_post_ra>
